<compile_context>
chip_gen: v5e
topology: v5e:2x2
jax: 0.10.0
libtpu: 0.0.40
codegen_flags: <defaults>
</compile_context>

<pallas_src>
import functools

import jax
import jax.numpy as jnp
from jax.experimental import pallas as pl
from jax.experimental.pallas import tpu as pltpu


def _gem_kernel(p_ref, x_ref, o_ref, acc_ref, *, eps, inv_hw):
    # p_ref:   (1,) f32 in SMEM (learnable GeM exponent)
    # x_ref:   (TB, TC, TS) input block in VMEM
    # o_ref:   (TB, TC) output block in VMEM (resident across the spatial axis)
    # acc_ref: (TB, TC) f32 VMEM scratch accumulator
    k = pl.program_id(2)

    @pl.when(k == 0)
    def _():
        acc_ref[...] = jnp.zeros_like(acc_ref)

    p = p_ref[0]
    x = x_ref[...].astype(jnp.float32)
    x = jnp.maximum(x, eps)                      # clamp(min=eps)          (VPU)
    xp = jnp.exp(p * jnp.log(x))                 # x ** p                  (EUP)
    acc_ref[...] += jnp.sum(xp, axis=-1)         # partial spatial sum     (XLU)

    @pl.when(k == pl.num_programs(2) - 1)
    def _():
        m = acc_ref[...] * inv_hw                            # mean over H*W
        o_ref[...] = jnp.exp(jnp.log(m) / p).astype(o_ref.dtype)  # m ** (1/p)


def _pick_block(total, target, multiple):
    """Largest divisor of `total` that is <= target and a multiple of `multiple`;
    falls back to the full extent (which always satisfies the (8,128) rule)."""
    if total <= target:
        return total
    for d in range(target, 0, -1):
        if total % d == 0 and d % multiple == 0:
            return d
    return total


def gem_pallas(x, p, eps=1e-6, *, block_b=8, block_c=256,
               vmem_tile_budget_bytes=4 * 1024 * 1024):
    """Pallas equivalent of GeM.forward for NCHW inputs (work_with_tokens=False)."""
    # TODO(synk): work_with_tokens=True (1-D token pooling over the sequence dim)
    #             path is not implemented here.
    B, C, H, W = x.shape
    HW = H * W
    x3 = x.reshape(B, C, HW)  # metadata-only reshape of contiguous trailing dims
    p = jnp.asarray(p, jnp.float32).reshape(1)

    tb = _pick_block(B, block_b, 8)      # output sublane dim: mult. of 8 or full B
    tc = _pick_block(C, block_c, 128)    # output lane dim:    mult. of 128 or full C

    # Spatial tile sized so one input buffer stays under the VMEM budget
    # (double-buffered by the pipeline).  Must be a multiple of 128 or full HW.
    itemsize = jnp.dtype(x.dtype).itemsize
    ts_target = max(int(vmem_tile_budget_bytes // (tb * tc * itemsize)), 128)
    ts = _pick_block(HW, ts_target, 128)

    grid = (B // tb, C // tc, HW // ts)

    out = pl.pallas_call(
        functools.partial(_gem_kernel, eps=float(eps), inv_hw=1.0 / float(HW)),
        out_shape=jax.ShapeDtypeStruct((B, C), x.dtype),
        grid=grid,
        in_specs=[
            # scalar exponent p: whole (1,) array resident in SMEM
            pl.BlockSpec(memory_space=pltpu.MemorySpace.SMEM),
            # activations: one (tb, tc, ts) tile per grid step
            pl.BlockSpec((tb, tc, ts), lambda i, j, k: (i, j, k)),
        ],
        # Same output block across the spatial (reduction) axis -> resident tile.
        out_specs=pl.BlockSpec((tb, tc), lambda i, j, k: (i, j)),
        scratch_shapes=[pltpu.VMEM((tb, tc), jnp.float32)],
        compiler_params=pltpu.CompilerParams(
            dimension_semantics=("parallel", "parallel", "arbitrary")),
    )(p, x3)

    # Re-attach the trailing singleton spatial dims (free reshape, no kernel).
    return out.reshape(B, C, 1, 1)


if __name__ == "__main__":
    key = jax.random.PRNGKey(0)
    B, C, H, W = 2, 4, 16, 16
    p_val, eps = 3.0, 1e-6

    x = jax.random.normal(key, (B, C, H, W), dtype=jnp.float32)
    p = jnp.array([p_val], dtype=jnp.float32)   # the nn.Parameter

    out = gem_pallas(x, p, eps=eps)
    jax.block_until_ready(out)

    # plain-JAX reference of the PyTorch gem()
    ref = jnp.mean(jnp.maximum(x, eps) ** p_val, axis=(2, 3)) ** (1.0 / p_val)
    ref = ref.reshape(B, C, 1, 1)

    assert out.shape == (B, C, 1, 1)
    assert out.dtype == x.dtype
    assert jnp.allclose(out, ref, rtol=1e-4, atol=1e-5), "mismatch vs reference"

    print("KERNEL_OK")
</pallas_src>

<mosaic_0001>
module attributes {stable_mosaic.version = 11 : i64} {
  func.func @_gem_kernel(%arg0: i32, %arg1: i32, %arg2: i32, %arg3: memref<1xf32, #tpu.memory_space<smem>>, %arg4: memref<2x4x256xf32, #tpu.memory_space<vmem>>, %arg5: memref<2x4xf32, #tpu.memory_space<vmem>>, %arg6: memref<2x4xf32, #tpu.memory_space<vmem>>) attributes {dimension_semantics = [#tpu.dimension_semantics<parallel>, #tpu.dimension_semantics<parallel>, #tpu.dimension_semantics<arbitrary>], iteration_bounds = array<i64: 1, 1, 1>, scalar_prefetch = 0 : i64, scratch_operands = 1 : i64, tpu.core_type = #tpu.core_type<tc>, window_params = [{transform_indices = @transform_0, window_bounds = array<i64: 1>}, {transform_indices = @transform_1, window_bounds = array<i64: 2, 4, 256>}, {transform_indices = @transform_2, window_bounds = array<i64: 2, 4>}]} {
    %c0_i32 = arith.constant 0 : i32
    %0 = arith.cmpi eq, %arg2, %c0_i32 : i32
    %1 = arith.extui %0 : i1 to i32
    %c0_i32_0 = arith.constant 0 : i32
    %2 = arith.cmpi ne, %1, %c0_i32_0 : i32
    scf.if %2 {
      %cst_11 = arith.constant 0.000000e+00 : f32
      %18 = vector.broadcast %cst_11 : f32 to vector<2x4xf32>
      %c0_12 = arith.constant 0 : index
      %c0_13 = arith.constant 0 : index
      %19 = vector.load %arg6[%c0_12, %c0_13] : memref<2x4xf32, #tpu.memory_space<vmem>>, vector<2x4xf32>
      tpu.vector_store %arg6[%c0_12, %c0_13], %18 {strides = array<i32>} : memref<2x4xf32, #tpu.memory_space<vmem>>, vector<2x4xf32>,
    } else {
    }
    %c0 = arith.constant 0 : index
    %3 = memref.load %arg3[%c0] : memref<1xf32, #tpu.memory_space<smem>>
    %c0_1 = arith.constant 0 : index
    %c0_2 = arith.constant 0 : index
    %c0_3 = arith.constant 0 : index
    %4 = vector.load %arg4[%c0_1, %c0_2, %c0_3] : memref<2x4x256xf32, #tpu.memory_space<vmem>>, vector<2x4x256xf32>
    %cst = arith.constant 9.99999997E-7 : f32
    %5 = vector.broadcast %cst : f32 to vector<2x4x256xf32>
    %6 = arith.maximumf %4, %5 : vector<2x4x256xf32>
    %7 = math.log %6 : vector<2x4x256xf32>
    %8 = vector.broadcast %3 : f32 to vector<2x4x256xf32>
    %9 = arith.mulf %8, %7 : vector<2x4x256xf32>
    %10 = math.exp %9 : vector<2x4x256xf32>
    %c0_4 = arith.constant 0 : index
    %c0_5 = arith.constant 0 : index
    %11 = vector.load %arg6[%c0_4, %c0_5] : memref<2x4xf32, #tpu.memory_space<vmem>>, vector<2x4xf32>
    %cst_6 = arith.constant dense<0.000000e+00> : vector<2x4xf32>
    %12 = vector.multi_reduction <add>, %10, %cst_6 [2] : vector<2x4x256xf32> to vector<2x4xf32>
    %13 = arith.addf %11, %12 : vector<2x4xf32>
    %c0_7 = arith.constant 0 : index
    %c0_8 = arith.constant 0 : index
    %14 = vector.load %arg6[%c0_7, %c0_8] : memref<2x4xf32, #tpu.memory_space<vmem>>, vector<2x4xf32>
    tpu.vector_store %arg6[%c0_7, %c0_8], %13 {strides = array<i32>} : memref<2x4xf32, #tpu.memory_space<vmem>>, vector<2x4xf32>,
    %c0_i32_9 = arith.constant 0 : i32
    %15 = arith.cmpi eq, %arg2, %c0_i32_9 : i32
    %16 = arith.extui %15 : i1 to i32
    %c0_i32_10 = arith.constant 0 : i32
    %17 = arith.cmpi ne, %16, %c0_i32_10 : i32
    scf.if %17 {
      %c0_11 = arith.constant 0 : index
      %c0_12 = arith.constant 0 : index
      %18 = vector.load %arg6[%c0_11, %c0_12] : memref<2x4xf32, #tpu.memory_space<vmem>>, vector<2x4xf32>
      %cst_13 = arith.constant 3.906250e-03 : f32
      %19 = vector.broadcast %cst_13 : f32 to vector<2x4xf32>
      %20 = arith.mulf %18, %19 : vector<2x4xf32>
      %21 = math.log %20 : vector<2x4xf32>
      %22 = vector.broadcast %3 : f32 to vector<2x4xf32>
      %23 = arith.divf %21, %22 : vector<2x4xf32>
      %24 = math.exp %23 : vector<2x4xf32>
      %c0_14 = arith.constant 0 : index
      %c0_15 = arith.constant 0 : index
      %25 = vector.load %arg5[%c0_14, %c0_15] : memref<2x4xf32, #tpu.memory_space<vmem>>, vector<2x4xf32>
      tpu.vector_store %arg5[%c0_14, %c0_15], %24 {strides = array<i32>} : memref<2x4xf32, #tpu.memory_space<vmem>>, vector<2x4xf32>,
    } else {
    }
    return
  }
  func.func @transform_0(%arg0: i32, %arg1: i32, %arg2: i32) -> i32 {
    %c0_i32 = arith.constant 0 : i32
    %c0_i32_0 = arith.constant 0 : i32
    return %c0_i32 : i32
  }
  func.func @transform_1(%arg0: i32, %arg1: i32, %arg2: i32) -> (i32, i32, i32) {
    %c0_i32 = arith.constant 0 : i32
    return %arg0, %arg1, %arg2 : i32, i32, i32
  }
  func.func @transform_2(%arg0: i32, %arg1: i32, %arg2: i32) -> (i32, i32) {
    %c0_i32 = arith.constant 0 : i32
    return %arg0, %arg1 : i32, i32
  }
}

</mosaic_0001>

<bundles_post_ra>
// kernel: tpu_custom_call.1
= control target key start
LH: loop header
LB: loop body
LE: loop exit
PB: predicated region body
PF: predicated region fallthrough
CT: control target
= control target key end

     0   :  { %8 = vsyncpa [#allocation5], 0  ;;  %s233_s0 = inlined_call_operand.<no memory space> [shape: f32[1], index: 0, kind: input, shape index: {}]   ;;  %s234_s1 = inlined_call_operand.hbm [shape: f32[2,4,256], index: 1, kind: input, shape index: {}]   ;;  %s235_s2 = inlined_call_operand.hbm [shape: f32[2,4], index: 2, kind: output, shape index: {}]  }
   0x1   :  { %9 = vsyncpa [#allocation6], 0  ;;  %s16_s11 = sshll.u32 %s234_s1, 4  ;;  %s201_s12 = smov [#allocation4]   ;;  %s17_s11 = int_to_ptr.hbm [resolvable:$true] %s16_s11 }
   0x2   :  { %s18_s13 = sshll.u32 %s201_s12, 4  ;;  %s202_s14 = smov 128   ;;  %s19_s13 = int_to_ptr.vmem [resolvable:$true] %s18_s13 }
   0x3   :  { %s203_s15 = smov 8  }
   0x4   :  { %24 = dma.hbm_to_vmem [thread:$0]  %s17_s11, 256, %s19_s13, [#allocation5], %s202_s14, %s202_s14, %s203_s15  }
   0x5   :  { %197 = dma.done.wait [#allocation5], 256  }
   0x6   :  { %198 = vsyncadd [#allocation5], 4294967040  ;;  %v36_v0 = vld [vmem:[#allocation4] sm:$0xff]  ;;  %v37_v1 = vld [vmem:[#allocation4 + $0x8] sm:$0xff]  ;;  %v44_v5 = vstv %s233_s0  ;;  %vm65_vm0 = vcmask 1043456   ;;  %vm33_vm1 = vcmask 25600   ;;  %v78_v27 = vlaneseq }
   0x7   :  { %v38_v2 = vmax.f32 %v36_v0, 1e-06  ;;  %v39_v3 = vmax.f32 %v37_v1, 1e-06  ;;  %v204_v25 = vmov 0.0   ;;  %vm82_vm2 = vcmask 1041409  }
   0x8   :  { %34 = vst.msk [vmem:[#allocation2] sm:$0x3] %vm33_vm1, %v204_v25  ;;  %v79_v28 = vand.u32 127, %v78_v27  ;;  %vm100_vm3 = vweird.f32 %v44_v5  ;;  %v106_v41 = vand.u32 2147483648, %v44_v5  ;;  %v104_v43 = vand.u32 2147483647, %v44_v5 }
   0x9   :  { %135 = vlog2.f32 %v38_v2  ;;  %s205_s0 = smov [#allocation7]   ;;  %s120_s20 = sshll.u32 %s235_s2, 4  ;;  %s121_s20 = int_to_ptr.hbm [resolvable:$true] %s120_s20 }
   0xa   :  { %137 = vlog2.f32 %v39_v3  ;;  %v107_v44 = vor.u32 1.1754944e-38, %v106_v41  ;;  %vm105_vm6 = vcmp.eq.f32.partialorder %v104_v43, 8.507059e+37  ;;  %s118_s1 = sshll.u32 %s205_s0, 4  ;;  %s119_s1 = int_to_ptr.vmem [resolvable:$true] %s118_s1 }
   0xf   :  { %v136_v4 = vpop.eup %135  ;;  %v51_v33 = vld [vmem:[#allocation2] sm:$0x3] }
  0x10   :  { %v138_v6 = vpop.eup %137  ;;  %v41_v7 = vmul.f32 0.6931472, %v136_v4 }
  0x11   :  { %v43_v8 = vmul.f32 0.6931472, %v138_v6 }
  0x12   :  { %v45_v9 = vmul.f32 %v44_v5, %v41_v7 }
  0x13   :  { %v46_v10 = vmul.f32 %v44_v5, %v43_v8 }
  0x14   :  { %v47_v11 = vmul.f32 1.442695, %v45_v9 }
  0x15   :  { %v49_v12 = vmul.f32 1.442695, %v46_v10 }
  0x16   :  { %139 = vpow2.f32 %v47_v11 }
  0x17   :  { %141 = vpow2.f32 %v49_v12 }
  0x18   :  { %143 = vrcp.f32 %v44_v5 }
  0x1c   :  { %v140_v13 = vpop.eup %139 }
  0x1d   :  { %v142_v14 = vpop.eup %141  ;;  %54 = vst [vmem:[#allocation1] ss:$2 sm:$0xff] %v140_v13 }
  0x1e   :  { %58 = vst [vmem:[#allocation1 + $0x10] ss:$2 sm:$0xff] %v142_v14  ;;  %v144_v29 = vpop.eup %143 }
  0x1f   :  { %v96_v35 = vmul.f32 %v144_v29, %v44_v5  ;;  %vm101_vm4 = vweird.f32 %v144_v29 }
  0x20   :  { %vm102_vm5 = vmor %vm100_vm3, %vm101_vm4 }
  0x21   :  { %v97_v37 = vsub.f32 1.0, %v96_v35 }
  0x23   :  { %v98_v38 = vmul.f32 %v144_v29, %v97_v37 }
  0x24   :  { %v55_v15 = vld.sshfl [vmem:[#allocation1] sm:$0xff pattern:$0x75316420]  ;;  %v56_v16 = vld.sshfl [vmem:[#allocation1 + $0x8] sm:$0xff pattern:$0x75316420] }
  0x25   :  { %v66_v17 = vsel %vm65_vm0, %v55_v15, 0.0  ;;  %v67_v18 = vsel %vm65_vm0, %v56_v16, 0.0  ;;  %v59_v20 = vld.sshfl [vmem:[#allocation1 + $0x10] sm:$0xff pattern:$0x75316420]  ;;  %v99_v42 = vadd.f32 %v144_v29, %v98_v38 }
  0x26   :  { %v68_v19 = vadd.f32 %v67_v18, %v66_v17  ;;  %v60_v21 = vld.sshfl [vmem:[#allocation1 + $0x18] sm:$0xff pattern:$0x75316420]  ;;  %v71_v22 = vsel %vm65_vm0, %v59_v20, 0.0 }
  0x27   :  { %v72_v23 = vsel %vm65_vm0, %v60_v21, 0.0  ;;  %v103_v45 = vsel %vm102_vm5, %v144_v29, %v99_v42 }
  0x28   :  { %69 = vadd.xlane.f32.xlu0 %v68_v19  ;;  %v73_v24 = vadd.f32 %v72_v23, %v71_v22  ;;  %v108_v47 = vsel %vm105_vm6, %v107_v44, %v103_v45 }
  0x30   :  { %74 = vadd.xlane.f32.xlu0 %v73_v24 }
  0x9b   :  { %v70_v26 = vpop.xlane.xlu0 %69 }
  0x9c   :  { %v80_v31 = vperm.slane %v70_v26, %v79_v28 }
  0xa3   :  { %v75_v30 = vpop.xlane.xlu0 %74 }
  0xa4   :  { %v81_v32 = vperm.slane %v75_v30, %v79_v28 }
  0xa6   :  { %v83_v34 = vsel %vm82_vm2, %v81_v32, %v80_v31 }
  0xa7   :  { %v85_v36 = vadd.f32 %v83_v34, %v51_v33 }
  0xa9   :  { %87 = vst.msk [vmem:[#allocation2] sm:$0x3] %vm33_vm1, %v85_v36 }
  0xb0   :  { %v91_v39 = vld [vmem:[#allocation2] sm:$0x3] }
  0xb1   :  { %v92_v40 = vmul.f32 0.00390625, %v91_v39 }
  0xb3   :  { %145 = vlog2.f32 %v92_v40 }
  0xb9   :  { %v146_v46 = vpop.eup %145 }
  0xba   :  { %v94_v48 = vmul.f32 0.6931472, %v146_v46 }
  0xbc   :  { %v109_v49 = vmul.f32 %v108_v47, %v94_v48 }
  0xbe   :  { %v110_v50 = vmul.f32 1.442695, %v109_v49 }
  0xc0   :  { %147 = vpow2.f32 %v110_v50 }
  0xc6   :  { %v148_v51 = vpop.eup %147 }
  0xc7   :  { %112 = vst.msk [vmem:[#allocation7] sm:$0x3] %vm33_vm1, %v148_v51 }
  0xc8   :  { %123 = dma.vmem_to_hbm [thread:$0]  %s119_s1, 32, %s121_s20, [#allocation6]  }
  0xc9   :  { %199 = dma.done.wait [#allocation6], 32  }
  0xca   :  { %200 = vsyncadd [#allocation6], 4294967264 }
  0xcb   :  { %128 = vsyncpa [#allocation5], 1 }
  0xcc   :  { %129 = vsyncpa [#allocation6], 1 }

</bundles_post_ra>
